<compile_context>
chip_gen: v5e
topology: v5e:2x2
jax: 0.10.0
libtpu: 0.0.40
codegen_flags: <defaults>
</compile_context>

<pallas_src>
import jax
import jax.numpy as jnp
from jax.experimental import pallas as pl
from jax.experimental.pallas import tpu as pltpu


# ~2 MiB tiles: tiled f32 streaming add measures >=86% of HBM roofline here,
# and the fixed per-grid-step overhead (~0.35 us) is well amortized.
_TARGET_TILE_BYTES = 2 << 20
# Below this output size, a separate kernel launch + pipeline prologue + extra
# HBM round trip loses to letting XLA fuse the add with neighboring ops.
_MIN_PALLAS_BYTES = 256 << 10
# Keep headroom under v7x's 64 MiB per-TC VMEM (v5e/v6e have 128 MiB).
_VMEM_CAP_BYTES = 48 << 20


def _pos_enc_kernel(x_ref, pe_ref, o_ref):
    # x_ref : (TB, TC) tile of the flattened (B, S*D) input
    # pe_ref: (1,  TC) matching tile of the flattened PE row (broadcast over rows)
    o_ref[...] = (x_ref[...] + pe_ref[...]).astype(o_ref.dtype)


def _aligned_divisor(n, align, cap):
    """Largest t <= cap with t % align == 0 and n % t == 0; None if none exists."""
    if align > n:
        return None
    t = (min(cap, n) // align) * align
    while t >= align:
        if n % t == 0:
            return t
        t -= align
    return None


def _sublane_align(*dtypes):
    """Row alignment for the second-to-last block dim: 8 (32-bit), 16 (16-bit), 32 (8-bit)."""
    bits = min(jnp.dtype(d).itemsize * 8 for d in dtypes)
    return max(8, 8 * (32 // bits))


def positional_encoding(x, pos_embedding, *, force_pallas=False,
                        keep_x_dtype=False, donate_x=False):
    """out = x + pos_embedding[:, :seq_len, :]  (PyTorch PositionalEncoding.forward).

    x: (B, S, D); pos_embedding: (1, max_len, D).
    keep_x_dtype: emit output in x.dtype (halves write traffic for bf16 activations)
                  instead of the strict PyTorch promotion dtype (off by default).
    donate_x:     alias the output onto x's buffer when dtypes match (footprint only).
    """
    B, S, D = x.shape
    one, max_len, D_pe = pos_embedding.shape
    if one != 1 or D_pe != D:
        raise ValueError(f"pos_embedding shape {pos_embedding.shape} incompatible with x {x.shape}")
    if S > max_len:
        raise ValueError(f"seq_len {S} exceeds max_len {max_len}")

    # Slice the table to exactly [:, :S, :] in the wrapper (S*D elements, negligible).
    # The flattened PE array then has length exactly F = S*D, so the full-axis block
    # fallback below is always a legal BlockSpec, even for awkward (S, D).
    if keep_x_dtype:
        out_dtype = x.dtype
        pe_s = pos_embedding[:, :S, :].astype(x.dtype)
    else:
        out_dtype = jnp.result_type(x.dtype, pos_embedding.dtype)
        pe_s = pos_embedding[:, :S, :]

    itemsize = jnp.dtype(out_dtype).itemsize
    x_itemsize = jnp.dtype(x.dtype).itemsize
    pe_itemsize = jnp.dtype(pe_s.dtype).itemsize

    # Fold (S, D) into one lane-dense axis (contiguous reshape: free view).
    F = S * D

    # Tiny problems: skip the custom call entirely; XLA fuses the add.
    if not force_pallas and B * F * itemsize < _MIN_PALLAS_BYTES:
        return (x + pe_s).astype(out_dtype)

    x2 = x.reshape(B, F)
    pe2 = pe_s.reshape(1, F)

    # ---- tile selection ------------------------------------------------------
    sub_align = _sublane_align(x.dtype, out_dtype)
    target_elems = max(128, _TARGET_TILE_BYTES // itemsize)

    # Lane (last) dim: 128-aligned divisor of F if one exists under the cap;
    # else the full axis when small (always legal); else a 128-aligned cap with
    # a masked partial edge block (also legal).
    lane_cap = max(128, target_elems // sub_align)
    TC = _aligned_divisor(F, 128, lane_cap)
    if TC is None:
        if F <= 2 * target_elems:
            TC = F
        else:
            TC = (lane_cap // 128) * 128

    # Row (second-to-last) dim: dtype-aware sublane alignment (8/16/32 rows).
    row_cap = max(sub_align, target_elems // TC)
    TB = _aligned_divisor(B, sub_align, row_cap)
    if TB is None:
        if B <= row_cap:
            TB = B
        else:
            TB = (row_cap // sub_align) * sub_align

    grid_f = pl.cdiv(F, TC)
    grid_b = pl.cdiv(B, TB)

    # v7x has 2 TensorCores: guarantee at least 2 grid steps along a parallel axis.
    if grid_f * grid_b < 2:
        if TC % 256 == 0:
            TC //= 2
        elif TB % (2 * sub_align) == 0:
            TB //= 2
        grid_f = pl.cdiv(F, TC)
        grid_b = pl.cdiv(B, TB)

    # Batch-chunk innermost: the PE block index only changes when the seq-chunk
    # does, so the PE tile stays VMEM-resident across the whole batch sweep.
    grid = (grid_f, grid_b)

    # VMEM budget: double-buffered x/out/pe tiles + slack, capped with headroom
    # under v7x's 64 MiB per-TC VMEM.
    need = 2 * (TB * TC * x_itemsize + TB * TC * itemsize + TC * pe_itemsize)
    vmem_bytes = int(min(_VMEM_CAP_BYTES, max(16 << 20, 2 * need)))

    cost = pl.CostEstimate(
        flops=B * F,
        transcendentals=0,
        bytes_accessed=B * F * (x_itemsize + itemsize) + F * pe_itemsize,
    )

    io_aliases = {}
    if donate_x and x.dtype == out_dtype:
        io_aliases = {0: 0}  # write output into x's buffer (footprint win only)

    out2 = pl.pallas_call(
        _pos_enc_kernel,
        out_shape=jax.ShapeDtypeStruct((B, F), out_dtype),
        grid_spec=pltpu.PrefetchScalarGridSpec(
            num_scalar_prefetch=0,
            grid=grid,
            in_specs=[
                pl.BlockSpec((TB, TC), lambda c, b: (b, c)),
                # PE blocks 0 .. grid_f-1 over the pre-sliced (1, F) table cover
                # exactly pos_embedding[:, :S, :] flattened.
                pl.BlockSpec((1, TC), lambda c, b: (0, c)),
            ],
            out_specs=pl.BlockSpec((TB, TC), lambda c, b: (b, c)),
        ),
        compiler_params=pltpu.CompilerParams(
            dimension_semantics=("parallel", "parallel"),
            vmem_limit_bytes=vmem_bytes,
        ),
        cost_estimate=cost,
        input_output_aliases=io_aliases,
        # TODO(synk): if DMA is still exposed on v7x after the larger tiles, sweep
        # pipeline_mode=pl.Buffered(3) on the x/out BlockSpecs (check VMEM budget).
    )(x2, pe2)

    return out2.reshape(B, S, D)


if __name__ == "__main__":
    # Module config (small, consistent with the forward pass).
    d_model = 32
    max_len = 500
    B, S = 2, 8

    key = jax.random.PRNGKey(0)
    k_pe, k_x, k_x2 = jax.random.split(key, 3)

    # Deterministic "parameter": pos_embedding ~ N(0,1), shape (1, max_len, d_model).
    pos_embedding = jax.random.normal(k_pe, (1, max_len, d_model), dtype=jnp.float32)

    # 1) Tiny, module-consistent shape. force_pallas so the kernel path actually runs
    #    (the auto heuristic would otherwise hand this to XLA fusion).
    x = jax.random.normal(k_x, (B, S, d_model), dtype=jnp.float32)
    out = positional_encoding(x, pos_embedding, force_pallas=True)
    jax.block_until_ready(out)
    ref = x + pos_embedding[:, :S, :]
    assert out.shape == ref.shape and out.dtype == ref.dtype
    assert jnp.allclose(out, ref, atol=1e-6, rtol=1e-6), "mismatch vs reference (small)"

    # 2) Slightly larger shape exercising the tiled / megacore-split path.
    B2, S2 = 16, 64
    x2 = jax.random.normal(k_x2, (B2, S2, d_model), dtype=jnp.float32)
    out2 = positional_encoding(x2, pos_embedding, force_pallas=True)
    jax.block_until_ready(out2)
    ref2 = x2 + pos_embedding[:, :S2, :]
    assert jnp.allclose(out2, ref2, atol=1e-6, rtol=1e-6), "mismatch vs reference (large)"

    print("KERNEL_OK")
</pallas_src>

<mosaic_0001>
module attributes {stable_mosaic.version = 11 : i64} {
  func.func @_pos_enc_kernel(%arg0: i32, %arg1: i32, %arg2: memref<2x128xf32, #tpu.memory_space<vmem>>, %arg3: memref<1x128xf32, #tpu.memory_space<vmem>>, %arg4: memref<2x128xf32, #tpu.memory_space<vmem>>) attributes {dimension_semantics = [#tpu.dimension_semantics<parallel>, #tpu.dimension_semantics<parallel>], iteration_bounds = array<i64: 2, 1>, scalar_prefetch = 0 : i64, scratch_operands = 0 : i64, tpu.core_type = #tpu.core_type<tc>, window_params = [{transform_indices = @transform_0, window_bounds = array<i64: 2, 128>}, {transform_indices = @transform_1, window_bounds = array<i64: 1, 128>}, {transform_indices = @transform_2, window_bounds = array<i64: 2, 128>}]} {
    %c0 = arith.constant 0 : index
    %c0_0 = arith.constant 0 : index
    %0 = vector.load %arg2[%c0, %c0_0] : memref<2x128xf32, #tpu.memory_space<vmem>>, vector<2x128xf32>
    %c0_1 = arith.constant 0 : index
    %c0_2 = arith.constant 0 : index
    %1 = vector.load %arg3[%c0_1, %c0_2] : memref<1x128xf32, #tpu.memory_space<vmem>>, vector<1x128xf32>
    %2 = vector.broadcast %1 : vector<1x128xf32> to vector<2x128xf32>
    %3 = arith.addf %0, %2 : vector<2x128xf32>
    %c0_3 = arith.constant 0 : index
    %c0_4 = arith.constant 0 : index
    %4 = vector.load %arg4[%c0_3, %c0_4] : memref<2x128xf32, #tpu.memory_space<vmem>>, vector<2x128xf32>
    tpu.vector_store %arg4[%c0_3, %c0_4], %3 {strides = array<i32>} : memref<2x128xf32, #tpu.memory_space<vmem>>, vector<2x128xf32>,
    return
  }
  func.func @transform_0(%arg0: i32, %arg1: i32) -> (i32, i32) {
    %c0_i32 = arith.constant 0 : i32
    return %arg1, %arg0 : i32, i32
  }
  func.func @transform_1(%arg0: i32, %arg1: i32) -> (i32, i32) {
    %c0_i32 = arith.constant 0 : i32
    %c0_i32_0 = arith.constant 0 : i32
    return %c0_i32, %arg0 : i32, i32
  }
  func.func @transform_2(%arg0: i32, %arg1: i32) -> (i32, i32) {
    %c0_i32 = arith.constant 0 : i32
    return %arg1, %arg0 : i32, i32
  }
}

</mosaic_0001>

<bundles_post_ra>
// kernel: tpu_custom_call.1
= control target key start
LH: loop header
LB: loop body
LE: loop exit
PB: predicated region body
PF: predicated region fallthrough
CT: control target
= control target key end

     0   :  { %7 = vsyncpa [#allocation3], 0  ;;  %s714_s0 = inlined_call_operand.hbm [shape: f32[2,256], index: 0, kind: input, shape index: {}]   ;;  %s715_s1 = inlined_call_operand.hbm [shape: f32[1,256], index: 1, kind: input, shape index: {}]   ;;  %s716_s2 = inlined_call_operand.hbm [shape: f32[2,256], index: 2, kind: output, shape index: {}]  }
   0x1   :  { %9 = vsyncpa [#allocation3 + $0x1], 0 }
   0x2   :  { %10 = vsyncpa [#allocation6], 0 }
   0x3   :  { %12 = vsyncpa [#allocation6 + $0x1], 0 }
   0x4   :  { %13 = vsyncpa [#allocation4], 0 }
   0x5   :  { %15 = vsyncpa [#allocation4 + $0x1], 0  ;;  %s584_s9 = smov 0   ;;  %s586_s10 = smov 0  }
   0x6   :  { %s588_s11 = smov 0   ;;  %s590_s12 = smov 0  }
   0x7   :  { %s592_s13 = smov 0   ;;  %s594_s14 = smov 0  }
   0x8 LB: > { %s340_s15 = sadd.s32 4294967295, %s567_s14   ;;  %s341_s16 = sadd.s32 4294967294, %s567_s14   ;;  %s567_s14 = sphi %s594_s14, %s21_s14   ;;  %s563_s13 = sphi %s592_s13, %s725_s13   ;;  %s559_s12 = sphi %s590_s12, %s724_s12   ;;  %s555_s11 = sphi %s588_s11, %s723_s11   ;;  %s551_s10 = sphi %s586_s10, %s722_s10   ;;  %s547_s9 = sphi %s584_s9, %s721_s9  }
   0x9   : > { %s33_s17 = sadd.s32 1, %s563_s13  ;;  %s42_s18 = sadd.s32 1, %s555_s11 }
   0xa   : > { %p35_p0 = scmp.ge.s32.totalorder %s33_s17, 2  ;;  %p49_p1 = scmp.ne.s32.totalorder %s555_s11, %s551_s10 }
   0xb   : > { %p50_p2 = scmp.eq.s32.totalorder %s567_s14, 0  ;;  %p55_p3 = scmp.ne.s32.totalorder %s551_s10, %s547_s9 }
   0xc   : > { %s727_s17 = smov (%p35_p0, %s33_s17), 0  ;;  %p56_p5 = scmp.eq.s32.totalorder %s340_s15, 0 }
   0xd   : > { %p625_p4 = por %p50_p2, %p49_p1  ;;  %s38_s20 = ssub.s32 %s563_s13, %s727_s17 }
   0xe   : > { %p107_p6 = scmp.eq.s32.totalorder %s340_s15, 1  ;;  %p40_p7 = scmp.eq.s32.totalorder %s38_s20, 0 }
   0xf   : > { %p631_p8 = por %p56_p5, %p55_p3  ;;  %p113_p10 = scmp.eq.s32.totalorder %s341_s16, 1 }
  0x10   : > { %p635_p9 = por %p107_p6, %p49_p1  ;;  %p343_p12 = scmp.ge.s32.totalorder %s567_s14, 2 }
  0x11   : > { %s640_s23 = scalar_select %p40_p7, %s555_s11, %s42_s18  }
  0x12   : > { %p642_p11 = por %p113_p10, %p55_p3  ;;  %p370_p13 = scmp.lt.s32.totalorder %s567_s14, 2 }
  0x13   : > { %s133_s25 = sand.u32 1, %s555_s11   ;;  %s345_s27 = sshll.u32 %s563_s13, 1 }
  0x14   : > { %s344_s26 = sshll.u32 %s133_s25, 1  ;;  %s143_s30 = scalar_lea.hbm %s714_s0, %s345_s27 }
  0x15   : > { %s137_s3 = scalar_lea.vmem [#allocation2], %s344_s26  ;;  %s145_s5 = sshll.u32 %s143_s30, 4  ;;  %s146_s5 = int_to_ptr.hbm [resolvable:$true] %s145_s5 }
  0x16   : > { %s147_s4 = sshll.u32 %s137_s3, 4  ;;  %p360_p0 = pnand %p370_p13, %p625_p4  ;;  %s148_s4 = int_to_ptr.vmem [resolvable:$true] %s147_s4 }
  0x17   : > { %p346_p1 = scmp.ge.s32.totalorder %s567_s14, 1  ;;  %p169_p2 = scmp.lt.s32.totalorder %s567_s14, 3 }
  0x18   : > { %s134_s6 = scalar_lea.sflag [#allocation3], %s133_s25  ;;  %s160_s15 = scalar_lea.hbm %s715_s1, %s563_s13 }
  0x19   : > { %362 = dma.hbm_to_vmem [thread:$0]  (!%p360_p0), %s146_s5, 32, %s148_s4, %s134_s6  }
  0x1a   : > { %p170_p3 = pnand %p346_p1, %p169_p2  ;;  %s157_s16 = scalar_lea.vmem [#allocation5], %s133_s25 }
  0x1b   : > { %s164_s18 = sshll.u32 %s157_s16, 4  ;;  %s162_s20 = sshll.u32 %s160_s15, 4  ;;  %s165_s18 = int_to_ptr.vmem [resolvable:$true] %s164_s18  ;;  %s163_s20 = int_to_ptr.hbm [resolvable:$true] %s162_s20 }
  0x1c   : > { %s155_s26 = scalar_lea.sflag [#allocation6], %s133_s25  ;;  %173 = sbr.rel (%p170_p3) target bundleno = 51 (0x33), region = 28 }
  0x1d   : > { %365 = dma.hbm_to_vmem [thread:$0]  (!%p360_p0), %s163_s20, 16, %s165_s18, %s155_s26  }
  0x1e   : > { %s662_s19 = sand.u32 (!%p170_p3), 1, %s551_s10  }
  0x1f   : > { %s347_s27 = sshll.u32 (!%p170_p3), %s662_s19, 1  ;;  %s176_s28 = scalar_lea.sflag (!%p170_p3), [#allocation3], %s662_s19 }
  0x20   : > { %s179_s29 = scalar_lea.vmem (!%p170_p3), [#allocation2], %s347_s27 }
  0x21   : > { %534 = dma.done.wait (%p631_p8), %s176_s28, 32  }
  0x22   : > { %536 = vsyncadd (%p631_p8), %s176_s28, 4294967264  ;;  %s186_s25 = scalar_lea.sflag [#allocation6], %s662_s19  ;;  %s188_s30 = scalar_lea.vmem [#allocation5], %s662_s19 }
  0x23   : > { %538 = dma.done.wait (%p631_p8), %s186_s25, 16  }
  0x24   : > { %540 = vsyncadd (%p631_p8), %s186_s25, 4294967280  ;;  %s350_s3 = sshll.u32 %s559_s12, 1  ;;  %s213_s7 = scalar_lea.vmem [#allocation7], %s347_s27  ;;  %v214_v0 = vld [vmem:[%s179_s29] sm:$0x3] }
  0x25   : > { %s234_s6 = scalar_lea.hbm %s716_s2, %s350_s3  ;;  %s236_s8 = sshll.u32 %s213_s7, 4  ;;  %v420_v1 = vld [vmem:[%s188_s30] ss:$0 sm:$0xff]  ;;  %s237_s8 = int_to_ptr.vmem [resolvable:$true] %s236_s8 }
  0x26   : > { %s238_s15 = sshll.u32 %s234_s6, 4  ;;  %v219_v2 = vadd.f32 %v420_v1, %v214_v0  ;;  %s222_s16 = scalar_lea.sflag [#allocation4], %s662_s19  ;;  %s239_s15 = int_to_ptr.hbm [resolvable:$true] %s238_s15 }
  0x27   : > { %s495_s21 = sshra.s32 %s239_s15, 4  ;;  %s501_s26 = scalar_lea.hbm %s716_s2, 4  ;;  %s496_s21 = int_to_ptr.hbm [resolvable:$true] %s495_s21 }
  0x28   : > { %220 = vst [vmem:[%s213_s7] sm:$0x3] %v219_v2  ;;  %s497_s18 = scalar_lea.hbm %s496_s21, 2  ;;  %p502_p7 = scmp.lt.s32.totalorder %s496_s21, %s716_s2 }
  0x29   : > { %p498_p4 = scmp.ne.s32.totalorder %s496_s21, %s497_s18  ;;  %p503_p8 = scmp.lt.s32.totalorder %s501_s26, %s497_s18 }
  0x2b   : > { %p499_p5 = pnand %p498_p4, %p635_p9  ;;  %p504_p10 = por %p503_p8, %p502_p7 }
  0x2d   : > { %p500_p6 = pneg %p499_p5 }
  0x2f   : > { %p505_p13 = pnand %p504_p10, %p500_p6 }
  0x31   : > { %508 = shalt.err (!%p505_p13)
}
  0x32   : > { %357 = dma.vmem_to_hbm [thread:$0]  (%p635_p9), %s237_s8, 32, %s239_s15, %s222_s16  }
  0x33 PF: > { %s250_s19 = sand.u32 1, %s547_s9   ;;  %p367_p0 = pnand %p343_p12, %p642_p11 }
  0x34   : > { %s251_s29 = scalar_lea.sflag [#allocation4], %s250_s19 }
  0x35   : > { %p368_p1 = pneg %p367_p0 }
  0x37   : > { %542 = dma.done.wait (%p368_p1), %s251_s29, 32  }
  0x38   : > { %544 = vsyncadd (%p368_p1), %s251_s29, 4294967264  ;;  %s21_s14 = sadd.s32 1, %s567_s14   ;;  %s721_s9 = smov %s551_s10 }
  0x39   : > { %p18_p2 = scmp.ge.s32.totalorder %s21_s14, 4   ;;  %s722_s10 = smov %s555_s11 }
  0x3a   : > { %s723_s11 = smov %s640_s23  ;;  %s724_s12 = smov %s563_s13 }
  0x3b   : > { %s725_s13 = smov %s727_s17  ;;  %20 = sbr.rel (!%p18_p2) target bundleno = 8 (0x8), region = 86 }
  0x40   :  { %257 = vsyncpa [#allocation3], 1 }
  0x41   :  { %259 = vsyncpa [#allocation3 + $0x1], 1 }
  0x42   :  { %260 = vsyncpa [#allocation6], 1 }
  0x43   :  { %262 = vsyncpa [#allocation6 + $0x1], 1 }
  0x44   :  { %263 = vsyncpa [#allocation4], 1 }
  0x45   :  { %265 = vsyncpa [#allocation4 + $0x1], 1 }

</bundles_post_ra>
